<compile_context>
chip_gen: v7x
topology: tpu7x:2x2x1
jax: 0.10.0
libtpu: 0.0.40
codegen_flags: <defaults>
</compile_context>

<pallas_src>
import jax
import jax.numpy as jnp
from jax.experimental import pallas as pl
from jax.experimental.pallas import tpu as pltpu


def _mix_kernel(s_ref, f1_ref, f2_ref, o_ref):
    """out = f2 + (f1 - f2) * s, with s = sigmoid(w) precomputed in SMEM."""
    f1 = f1_ref[...]
    f2 = f2_ref[...]
    s = s_ref[0].astype(f1.dtype)            # native-dtype lerp (bf16 stays bf16)
    o_ref[...] = (f2 + (f1 - f2) * s).astype(o_ref.dtype)


def _sublane_multiple(itemsize):
    # Packed-sublane tile heights: f32 -> 8, bf16/f16 -> 16, int8/fp8 -> 32.
    return max(8, 32 // itemsize)


def _vmem_limit_bytes():
    # v5e/v6e: 128 MiB physical VMEM, v7x: 64 MiB. Cap the scoped limit at
    # min(32 MiB, half of physical) so 3 operands x 2 buffers x ~4 MiB (+ internal
    # scratch) always fits on every generation.
    try:
        cap = int(getattr(pltpu.get_tpu_info(), "vmem_capacity_bytes", 64 << 20))
    except Exception:
        cap = 64 << 20
    return min(32 << 20, cap // 2)


def _choose_tiling(n, itemsize, target_block_bytes, vmem_limit):
    """Lane-dense tiling of n (a multiple of 128) elements -> (lane, rows, tm, grid)."""
    sub = _sublane_multiple(itemsize)

    # Widest lane (multiple of 128) dividing n while keeping >= sub rows -> wide
    # unmasked stores with full sublane utilization; n is a multiple of 128 so
    # the divisor list is never empty.
    divisors = [l for l in (4096, 2048, 1024, 512, 256, 128) if n % l == 0]
    lane = next((l for l in divisors if n // l >= sub), divisors[-1])
    rows = n // lane

    # Keep the double-buffered pipeline (3 operands x 2 buffers) under the limit.
    max_block_bytes = max(lane * itemsize * sub, (vmem_limit - (4 << 20)) // 6)
    block_bytes = min(target_block_bytes, max_block_bytes)

    tm = max(sub, (block_bytes // (lane * itemsize)) // sub * sub)
    if rows <= tm:
        op_bytes = n * itemsize
        if op_bytes >= (1 << 20) and rows >= 4 * sub:
            # Never collapse a >= 1 MiB operand into one grid step: keep ~4 blocks
            # so DMA double-buffering and the v7x megacore split stay engaged.
            tm = pl.cdiv(pl.cdiv(rows, 4), sub) * sub
        else:
            tm = rows                         # tiny array: full-dim block (always valid)
    grid = pl.cdiv(rows, tm)                  # last block may be partial; Pallas masks it
    return lane, rows, tm, grid


def _mix_slab(s, f1_2d, f2_2d, tm, grid, vmem_limit, alias_fea2):
    rows, lane = f1_2d.shape
    dtype = f1_2d.dtype
    itemsize = jnp.dtype(dtype).itemsize
    tile = pl.BlockSpec((tm, lane), lambda i: (i, 0))
    return pl.pallas_call(
        _mix_kernel,
        out_shape=jax.ShapeDtypeStruct((rows, lane), dtype),
        grid=(grid,),
        in_specs=[
            pl.BlockSpec(memory_space=pltpu.SMEM),   # sigmoid(w) scalar
            tile,                                    # fea1 tile
            tile,                                    # fea2 tile
        ],
        out_specs=pl.BlockSpec((tm, lane), lambda i: (i, 0)),
        compiler_params=pltpu.CompilerParams(
            dimension_semantics=("parallel",),       # megacore split (v7x)
            vmem_limit_bytes=vmem_limit,
        ),
        cost_estimate=pl.CostEstimate(
            flops=3 * rows * lane,
            transcendentals=0,
            bytes_accessed=3 * rows * lane * itemsize,
        ),
        input_output_aliases=({2: 0} if alias_fea2 else {}),
    )(s, f1_2d, f2_2d)


def mix_forward(fea1, fea2, w, *, target_block_bytes=4 << 20, donate_fea2=False):
    """Pallas implementation of Mix.forward.

    fea1, fea2: [N, C, H, W] arrays (any float dtype, NCHW like PyTorch).
    w:          learnable scalar parameter, shape (1,).
    donate_fea2: alias the output onto fea2's buffer (only if the caller discards fea2).
    """
    assert fea1.shape == fea2.shape and fea1.dtype == fea2.dtype
    orig_shape = fea1.shape
    dtype = fea1.dtype
    itemsize = jnp.dtype(dtype).itemsize
    total = fea1.size

    # sigmoid(w): one scalar op, hoisted entirely out of the grid loop.
    s = jax.nn.sigmoid(w.astype(jnp.float32)).reshape(1)

    f1 = fea1.reshape(-1)
    f2 = fea2.reshape(-1)

    # Lane-dense 128-divisible prefix runs through the kernel; the (<128-element)
    # ragged tail is computed with plain jnp. No jnp.pad / output-slice passes.
    prefix = (total // 128) * 128
    tail = total - prefix

    if prefix == 0:
        # <128 elements: not worth a kernel launch.
        out = (f2 + (f1 - f2) * s[0]).astype(dtype)
        return out.reshape(orig_shape)

    vmem_limit = _vmem_limit_bytes()
    lane, rows, tm, grid = _choose_tiling(prefix, itemsize, target_block_bytes, vmem_limit)

    if tail:
        f1_2d = f1[:prefix].reshape(rows, lane)
        f2_2d = f2[:prefix].reshape(rows, lane)
    else:
        f1_2d = f1.reshape(rows, lane)        # free (row-major) reshape
        f2_2d = f2.reshape(rows, lane)

    main = _mix_slab(s, f1_2d, f2_2d, tm, grid, vmem_limit, donate_fea2)

    if tail == 0:
        return main.reshape(orig_shape)

    tail_out = (f2[prefix:] + (f1[prefix:] - f2[prefix:]) * s[0]).astype(dtype)
    return jnp.concatenate([main.reshape(-1), tail_out]).reshape(orig_shape)


def _reference(fea1, fea2, w):
    mf = jax.nn.sigmoid(w.astype(jnp.float32))[0]
    return (fea1.astype(jnp.float32) * mf
            + fea2.astype(jnp.float32) * (1.0 - mf)).astype(fea1.dtype)


if __name__ == "__main__":
    key = jax.random.PRNGKey(0)
    keys = jax.random.split(key, 10)

    # Deterministic parameter init, matching nn.Parameter(torch.FloatTensor([-0.8]))
    w = jnp.array([-0.8], dtype=jnp.float32)

    # Case 1: primary small case (lane-dense, no tail, single block).
    N, C, H, W = 2, 4, 16, 16
    fea1 = jax.random.normal(keys[0], (N, C, H, W), dtype=jnp.float32)
    fea2 = jax.random.normal(keys[1], (N, C, H, W), dtype=jnp.float32)
    out = jax.block_until_ready(mix_forward(fea1, fea2, w))
    assert out.shape == (N, C, H, W)
    assert jnp.allclose(out, _reference(fea1, fea2, w), atol=1e-5, rtol=1e-5)

    # Case 2: 7x7 feature map (147 elements -> kernel on 128-prefix, jnp tail).
    fea1b = jax.random.normal(keys[2], (1, 3, 7, 7), dtype=jnp.float32)
    fea2b = jax.random.normal(keys[3], (1, 3, 7, 7), dtype=jnp.float32)
    outb = jax.block_until_ready(mix_forward(fea1b, fea2b, w))
    assert outb.shape == (1, 3, 7, 7)
    assert jnp.allclose(outb, _reference(fea1b, fea2b, w), atol=1e-5, rtol=1e-5)

    # Case 3: small block budget -> multi-step grid with a partial last block.
    fea1c = jax.random.normal(keys[4], (2, 12, 32, 32), dtype=jnp.float32)
    fea2c = jax.random.normal(keys[5], (2, 12, 32, 32), dtype=jnp.float32)
    outc = jax.block_until_ready(
        mix_forward(fea1c, fea2c, w, target_block_bytes=32 * 1024))
    assert outc.shape == (2, 12, 32, 32)
    assert jnp.allclose(outc, _reference(fea1c, fea2c, w), atol=1e-5, rtol=1e-5)

    # Case 4: ~2 MiB/operand -> anti-collapse split into ~4 blocks (pipelining +
    # v7x megacore), still lane-dense and copy-free.
    fea1d = jax.random.normal(keys[6], (2, 32, 64, 64), dtype=jnp.float32)
    fea2d = jax.random.normal(keys[7], (2, 32, 64, 64), dtype=jnp.float32)
    outd = jax.block_until_ready(mix_forward(fea1d, fea2d, w))
    assert outd.shape == (2, 32, 64, 64)
    assert jnp.allclose(outd, _reference(fea1d, fea2d, w), atol=1e-5, rtol=1e-5)

    # Case 5: bf16 inputs -> dtype-aware sublane multiple (16) + native-dtype lerp.
    fea1e = jax.random.normal(keys[8], (2, 4, 16, 16), dtype=jnp.bfloat16)
    fea2e = jax.random.normal(keys[9], (2, 4, 16, 16), dtype=jnp.bfloat16)
    oute = jax.block_until_ready(mix_forward(fea1e, fea2e, w))
    assert oute.shape == (2, 4, 16, 16)
    assert jnp.allclose(oute.astype(jnp.float32),
                        _reference(fea1e, fea2e, w).astype(jnp.float32),
                        atol=5e-2, rtol=5e-2)

    print("KERNEL_OK")
</pallas_src>

<mosaic_0001>
module attributes {stable_mosaic.version = 11 : i64} {
  func.func @_mix_kernel(%arg0: i32, %arg1: memref<1xf32, #tpu.memory_space<smem>>, %arg2: memref<8x256xf32, #tpu.memory_space<vmem>>, %arg3: memref<8x256xf32, #tpu.memory_space<vmem>>, %arg4: memref<8x256xf32, #tpu.memory_space<vmem>>) attributes {dimension_semantics = [#tpu.dimension_semantics<parallel>], iteration_bounds = array<i64: 1>, scalar_prefetch = 0 : i64, scratch_operands = 0 : i64, tpu.core_type = #tpu.core_type<tc>, window_params = [{transform_indices = @transform_0, window_bounds = array<i64: 1>}, {transform_indices = @transform_1, window_bounds = array<i64: 8, 256>}, {transform_indices = @transform_2, window_bounds = array<i64: 8, 256>}, {transform_indices = @transform_3, window_bounds = array<i64: 8, 256>}]} {
    %c0 = arith.constant 0 : index
    %c0_0 = arith.constant 0 : index
    %0 = vector.load %arg2[%c0, %c0_0] : memref<8x256xf32, #tpu.memory_space<vmem>>, vector<8x256xf32>
    %c0_1 = arith.constant 0 : index
    %c0_2 = arith.constant 0 : index
    %1 = vector.load %arg3[%c0_1, %c0_2] : memref<8x256xf32, #tpu.memory_space<vmem>>, vector<8x256xf32>
    %c0_3 = arith.constant 0 : index
    %2 = memref.load %arg1[%c0_3] : memref<1xf32, #tpu.memory_space<smem>>
    %3 = arith.subf %0, %1 : vector<8x256xf32>
    %4 = vector.broadcast %2 : f32 to vector<8x256xf32>
    %5 = arith.mulf %3, %4 : vector<8x256xf32>
    %6 = arith.addf %1, %5 : vector<8x256xf32>
    %c0_4 = arith.constant 0 : index
    %c0_5 = arith.constant 0 : index
    %7 = vector.load %arg4[%c0_4, %c0_5] : memref<8x256xf32, #tpu.memory_space<vmem>>, vector<8x256xf32>
    tpu.vector_store %arg4[%c0_4, %c0_5], %6 {strides = array<i32>} : memref<8x256xf32, #tpu.memory_space<vmem>>, vector<8x256xf32>,
    return
  }
  func.func @transform_0(%arg0: i32) -> i32 {
    %c0_i32 = arith.constant 0 : i32
    %c0_i32_0 = arith.constant 0 : i32
    return %c0_i32 : i32
  }
  func.func @transform_1(%arg0: i32) -> (i32, i32) {
    %c0_i32 = arith.constant 0 : i32
    %c0_i32_0 = arith.constant 0 : i32
    return %arg0, %c0_i32 : i32, i32
  }
  func.func @transform_2(%arg0: i32) -> (i32, i32) {
    %c0_i32 = arith.constant 0 : i32
    %c0_i32_0 = arith.constant 0 : i32
    return %arg0, %c0_i32 : i32, i32
  }
  func.func @transform_3(%arg0: i32) -> (i32, i32) {
    %c0_i32 = arith.constant 0 : i32
    %c0_i32_0 = arith.constant 0 : i32
    return %arg0, %c0_i32 : i32, i32
  }
}

</mosaic_0001>

<bundles_post_ra>
// kernel: tpu_custom_call.1
= control target key start
LH: loop header
LB: loop body
LE: loop exit
PB: predicated region body
PF: predicated region fallthrough
CT: control target
= control target key end

     0   :  { %9 = vsyncpa [#allocation4], 0  ;;  %s207_s0 = inlined_call_operand.<no memory space> [shape: f32[1], index: 0, kind: input, shape index: {}]   ;;  %s208_s1 = inlined_call_operand.hbm [shape: f32[8,256], index: 1, kind: input, shape index: {}]   ;;  %s209_s2 = inlined_call_operand.hbm [shape: f32[8,256], index: 2, kind: input, shape index: {}]   ;;  %s210_s3 = inlined_call_operand.hbm [shape: f32[8,256], index: 3, kind: output, shape index: {}]  }
   0x1   :  { %10 = vsyncpa [#allocation7], 0 }
   0x2   :  { %11 = vsyncpa [#allocation5], 0  ;;  %s145_s12 = smov [#allocation3]   ;;  %s146_s14 = smov [#allocation6]  }
   0x3   :  { %s20_s13 = sshll.u32 %s145_s12, 4  ;;  %s30_s15 = sshll.u32 %s146_s14, 4  ;;  %s21_s13 = int_to_ptr.vmem [resolvable:$true] %s20_s13  ;;  %s31_s15 = int_to_ptr.vmem [resolvable:$true] %s30_s15 }
   0x4   :  { %s73_s18 = scalar_lea.hbm %s208_s1, 256 }
   0x5   :  { %p74_p0 = scmp.ne.s32.totalorder %s208_s1, %s73_s18  ;;  %p77_p1 = scmp.lt.u32.totalorder %s73_s18, %s208_s1 }
   0x7   :  { %p79_p2 = pnand %p77_p1, %p74_p0 }
   0x9   :  { %82 = shalt.err (!%p79_p2)
}
   0xa   :  { %s83_s23 = scalar_lea.vmem %s21_s13, 256  ;;  %p88_p4 = scmp.lt.s32.totalorder %s21_s13, %s21_s13 }
   0xb   :  { %p84_p3 = scmp.ne.s32.totalorder %s21_s13, %s83_s23  ;;  %p89_p5 = scmp.lt.s32.totalorder %s83_s23, %s83_s23 }
   0xd   :  { %p90_p6 = por %p89_p5, %p88_p4 }
   0xf   :  { %p91_p7 = pnand %p90_p6, %p84_p3 }
  0x11   :  { %94 = shalt.err (!%p91_p7)
}
  0x12   :  { %23 = dma.hbm_to_vmem [thread:$0]  %s208_s1, 256, %s21_s13, [#allocation4]  }
  0x13   :  { %s95_s28 = scalar_lea.hbm %s209_s2, 256 }
  0x14   :  { %p96_p8 = scmp.ne.s32.totalorder %s209_s2, %s95_s28  ;;  %p99_p9 = scmp.lt.u32.totalorder %s95_s28, %s209_s2 }
  0x16   :  { %p101_p10 = pnand %p99_p9, %p96_p8 }
  0x18   :  { %104 = shalt.err (!%p101_p10)
}
  0x19   :  { %s105_s6 = scalar_lea.vmem %s31_s15, 256  ;;  %p110_p12 = scmp.lt.s32.totalorder %s31_s15, %s31_s15 }
  0x1a   :  { %p106_p11 = scmp.ne.s32.totalorder %s31_s15, %s105_s6  ;;  %p111_p13 = scmp.lt.s32.totalorder %s105_s6, %s105_s6 }
  0x1c   :  { %p112_p0 = por %p111_p13, %p110_p12 }
  0x1e   :  { %p113_p1 = pnand %p112_p0, %p106_p11 }
  0x20   :  { %116 = shalt.err (!%p113_p1)
}
  0x21   :  { %33 = dma.hbm_to_vmem [thread:$0]  %s209_s2, 256, %s31_s15, [#allocation7]  }
  0x22   :  { %139 = dma.done.wait [#allocation4], 256  }
  0x23   :  { %140 = vsyncadd [#allocation4], 4294967040 }
  0x24   :  { %141 = dma.done.wait [#allocation7], 256  }
  0x25   :  { %142 = vsyncadd [#allocation7], 4294967040  ;;  %v40_v0 = vld [vmem:[#allocation3] sm:$0xff]  ;;  %v42_v1 = vld [vmem:[#allocation6] sm:$0xff]  ;;  %v47_v2 = vstv %s207_s0  ;;  %s147_s10 = smov [#allocation8]  }
  0x26   :  { %v41_v3 = vld [vmem:[#allocation3 + $0x8] sm:$0xff]  ;;  %v45_v4 = vsub.f32 %v40_v0, %v42_v1  ;;  %v43_v5 = vld [vmem:[#allocation6 + $0x8] sm:$0xff]  ;;  %s60_s11 = sshll.u32 %s147_s10, 4  ;;  %s61_s11 = int_to_ptr.vmem [resolvable:$true] %s60_s11 }
  0x27   :  { %v46_v6 = vsub.f32 %v41_v3, %v43_v5  ;;  %s117_s2 = scalar_lea.vmem %s61_s11, 256  ;;  %p122_p3 = scmp.lt.s32.totalorder %s61_s11, %s61_s11 }
  0x28   :  { %v48_v7 = vmul.f32 %v47_v2, %v45_v4  ;;  %p118_p2 = scmp.ne.s32.totalorder %s61_s11, %s117_s2  ;;  %p123_p4 = scmp.lt.s32.totalorder %s117_s2, %s117_s2 }
  0x29   :  { %v49_v8 = vmul.f32 %v47_v2, %v46_v6 }
  0x2a   :  { %v50_v9 = vadd.f32 %v48_v7, %v42_v1  ;;  %p124_p5 = por %p123_p4, %p122_p3 }
  0x2b   :  { %v51_v10 = vadd.f32 %v49_v8, %v43_v5 }
  0x2c   :  { %52 = vst [vmem:[#allocation8] sm:$0xff] %v50_v9  ;;  %p125_p6 = pnand %p124_p5, %p118_p2 }
  0x2d   :  { %53 = vst [vmem:[#allocation8 + $0x8] sm:$0xff] %v51_v10 }
  0x2e   :  { %128 = shalt.err (!%p125_p6)
}
  0x2f   :  { %s129_s13 = scalar_lea.hbm %s210_s3, 256 }
  0x30   :  { %p130_p7 = scmp.ne.s32.totalorder %s210_s3, %s129_s13  ;;  %p133_p8 = scmp.lt.u32.totalorder %s129_s13, %s210_s3 }
  0x32   :  { %p135_p9 = pnand %p133_p8, %p130_p7 }
  0x34   :  { %138 = shalt.err (!%p135_p9)
}
  0x35   :  { %63 = dma.vmem_to_hbm [thread:$0]  %s61_s11, 256, %s210_s3, [#allocation5]  }
  0x36   :  { %143 = dma.done.wait [#allocation5], 256  }
  0x37   :  { %144 = vsyncadd [#allocation5], 4294967040 }
  0x38   :  { %67 = vsyncpa [#allocation4], 1 }
  0x39   :  { %68 = vsyncpa [#allocation7], 1 }
  0x3a   :  { %69 = vsyncpa [#allocation5], 1 }

</bundles_post_ra>
